<compile_context>
chip_gen: v5e
topology: v5e:2x2
jax: 0.10.0
libtpu: 0.0.40
codegen_flags: <defaults>
</compile_context>

<pallas_src>
import jax
import jax.numpy as jnp
from jax.experimental import pallas as pl
from jax.experimental.pallas import tpu as pltpu

IMAGE_RESIZE_SIZE = 15
IN_FEATURES = IMAGE_RESIZE_SIZE * IMAGE_RESIZE_SIZE * 3  # 675
H1 = 128
H2 = 64
NUM_CLASSES = 43  # stand-in for len(cats)

# Lane-aligned (padded) sizes used for the hidden/output dims only (zero-pad = exact no-op).
H2_PAD = 128   # 64  -> 128
N_PAD = 128    # 43  -> 128 (sliced back outside)

TM_MAX = 1024  # batch tile; ~7 MB double-buffered footprint, fits v5e's 16 MiB scoped VMEM


def _mlp_kernel(x_ref, w1_ref, b1_ref, w2_ref, b2_ref, w3_ref, b3_ref, o_ref):
    # fc1 + ReLU   (bn1 = Identity, dropout p=0.0 = Identity)
    # x arrives as raw f32; bf16 cast happens here on the VPU (free — MXU/DMA dominate).
    x = x_ref[...].astype(jnp.bfloat16)
    h = jnp.dot(x, w1_ref[...], preferred_element_type=jnp.float32)
    h = jnp.maximum(h + b1_ref[...], 0.0)
    # fc2 + ReLU   (bn2 = Identity, dropout p=0.0 = Identity)
    h = jnp.dot(h.astype(jnp.bfloat16), w2_ref[...], preferred_element_type=jnp.float32)
    h = jnp.maximum(h + b2_ref[...], 0.0)
    # fc3 (logits, padded to 128 lanes; extra columns are exact zeros)
    h = jnp.dot(h.astype(jnp.bfloat16), w3_ref[...], preferred_element_type=jnp.float32)
    o_ref[...] = (h + b3_ref[...]).astype(o_ref.dtype)


def prepare_params(params):
    """One-time weight/bias pad + bf16 cast (hoisted out of the per-call forward path)."""
    w1, b1, w2, b2, w3, b3 = params
    w1_p = w1.astype(jnp.bfloat16)                                              # (675, 128)
    w2_p = jnp.pad(w2, ((0, 0), (0, H2_PAD - H2))).astype(jnp.bfloat16)         # (128, 128)
    w3_p = jnp.pad(w3, ((0, H2_PAD - H2), (0, N_PAD - NUM_CLASSES))).astype(jnp.bfloat16)
    b1_p = b1.reshape(1, H1).astype(jnp.float32)
    b2_p = jnp.pad(b2, (0, H2_PAD - H2)).reshape(1, H2_PAD).astype(jnp.float32)
    b3_p = jnp.pad(b3, (0, N_PAD - NUM_CLASSES)).reshape(1, N_PAD).astype(jnp.float32)
    return (w1_p, b1_p, w2_p, b2_p, w3_p, b3_p)


@jax.jit
def traffic_sign_net_forward(x_nchw, padded_params):
    """x_nchw: (B, 3, 15, 15) float32. padded_params from prepare_params().
    Returns logits (B, NUM_CLASSES) float32."""
    B = x_nchw.shape[0]
    # Same flatten semantics as torch: x.view(-1, 15*15*3) on an NCHW tensor.
    x = x_nchw.reshape(B, IN_FEATURES)

    w1_p, b1_p, w2_p, b2_p, w3_p, b3_p = padded_params

    # Batch tile selection (zero-copy x, no batch padding):
    #  * B <= TM_MAX: single tile, tm == B -> batch block equals the full array dim
    #    (always layout-legal, no masking, grid of 1).
    #  * B >  TM_MAX: tm = 1024 (multiple of 16, bf16-native sublane packing); Pallas masks
    #    the partial last block.  Safe because every layer is row-independent and the
    #    caller slices [:B] (do NOT add batch reductions without revisiting this).
    tm = B if B <= TM_MAX else TM_MAX
    grid = (pl.cdiv(B, tm),)

    # Weights/biases: full-array blocks, always block (0,0) -> DMA'd once, resident in VMEM.
    resident = lambda shape: pl.BlockSpec(shape, lambda i: (0, 0))

    flops = 2 * B * (IN_FEATURES * H1 + H1 * H2_PAD + H2_PAD * N_PAD)
    bytes_accessed = (
        x.size * 4                                     # f32 activations in
        + w1_p.size * 2 + w2_p.size * 2 + w3_p.size * 2  # bf16 weights
        + (H1 + H2_PAD + N_PAD) * 4                    # f32 biases
        + B * N_PAD * 2                                # bf16 logits out
    )

    out_padded = pl.pallas_call(
        _mlp_kernel,
        out_shape=jax.ShapeDtypeStruct((B, N_PAD), jnp.bfloat16),
        grid_spec=pl.GridSpec(
            grid=grid,
            in_specs=[
                pl.BlockSpec((tm, IN_FEATURES), lambda i: (i, 0)),  # x: tiled over batch
                resident((IN_FEATURES, H1)),
                resident((1, H1)),
                resident((H1, H2_PAD)),
                resident((1, H2_PAD)),
                resident((H2_PAD, N_PAD)),
                resident((1, N_PAD)),
            ],
            out_specs=pl.BlockSpec((tm, N_PAD), lambda i: (i, 0)),
        ),
        compiler_params=pltpu.CompilerParams(
            dimension_semantics=("parallel",),  # shard batch tiles across TCs on v7x
        ),
        cost_estimate=pl.CostEstimate(
            flops=flops, transcendentals=0, bytes_accessed=bytes_accessed
        ),
    )(x, w1_p, b1_p, w2_p, b2_p, w3_p, b3_p)

    return out_padded[:, :NUM_CLASSES].astype(jnp.float32)


def init_params(key):
    """Deterministic init mimicking nn.Linear default: U(-1/sqrt(fan_in), 1/sqrt(fan_in))."""
    def linear_init(k, fan_in, fan_out):
        kw, kb = jax.random.split(k)
        bound = 1.0 / jnp.sqrt(jnp.float32(fan_in))
        # Note: torch stores weight as (out, in); we keep (in, out) so the kernel does x @ W.
        w = jax.random.uniform(kw, (fan_in, fan_out), jnp.float32, -bound, bound)
        b = jax.random.uniform(kb, (fan_out,), jnp.float32, -bound, bound)
        return w, b

    k1, k2, k3 = jax.random.split(key, 3)
    w1, b1 = linear_init(k1, IN_FEATURES, H1)
    w2, b2 = linear_init(k2, H1, H2)
    w3, b3 = linear_init(k3, H2, NUM_CLASSES)
    return (w1, b1, w2, b2, w3, b3)


if __name__ == "__main__":
    key = jax.random.PRNGKey(0)
    k_x, k_p = jax.random.split(key)

    B = 8
    x = jax.random.normal(k_x, (B, 3, IMAGE_RESIZE_SIZE, IMAGE_RESIZE_SIZE), jnp.float32)
    params = init_params(k_p)
    padded_params = prepare_params(params)   # one-time weight prep, outside the forward path

    logits = traffic_sign_net_forward(x, padded_params)
    jax.block_until_ready(logits)

    # Reference check in plain JAX f32 (kernel uses bf16 weights/activations/output with f32
    # accumulation, so tolerance is relaxed accordingly).
    w1, b1, w2, b2, w3, b3 = params
    xf = x.reshape(B, IN_FEATURES)
    ref = jnp.maximum(xf @ w1 + b1, 0.0)
    ref = jnp.maximum(ref @ w2 + b2, 0.0)
    ref = ref @ w3 + b3

    assert logits.shape == (B, NUM_CLASSES)
    assert jnp.allclose(logits, ref, atol=5e-2, rtol=5e-2), (
        float(jnp.max(jnp.abs(logits - ref)))
    )

    print("KERNEL_OK")
</pallas_src>

<mosaic_0001>
module attributes {stable_mosaic.version = 11 : i64} {
  func.func @_mlp_kernel(%arg0: i32, %arg1: memref<8x675xf32, #tpu.memory_space<vmem>>, %arg2: memref<675x128xbf16, #tpu.memory_space<vmem>>, %arg3: memref<1x128xf32, #tpu.memory_space<vmem>>, %arg4: memref<128x128xbf16, #tpu.memory_space<vmem>>, %arg5: memref<1x128xf32, #tpu.memory_space<vmem>>, %arg6: memref<128x128xbf16, #tpu.memory_space<vmem>>, %arg7: memref<1x128xf32, #tpu.memory_space<vmem>>, %arg8: memref<8x128xbf16, #tpu.memory_space<vmem>>) attributes {dimension_semantics = [#tpu.dimension_semantics<parallel>], iteration_bounds = array<i64: 1>, scalar_prefetch = 0 : i64, scratch_operands = 0 : i64, tpu.core_type = #tpu.core_type<tc>, window_params = [{transform_indices = @transform_0, window_bounds = array<i64: 8, 675>}, {pipeline_mode = #tpu.pipeline_mode<synchronous>, transform_indices = @transform_1, window_bounds = array<i64: 675, 128>}, {pipeline_mode = #tpu.pipeline_mode<synchronous>, transform_indices = @transform_2, window_bounds = array<i64: 1, 128>}, {pipeline_mode = #tpu.pipeline_mode<synchronous>, transform_indices = @transform_3, window_bounds = array<i64: 128, 128>}, {pipeline_mode = #tpu.pipeline_mode<synchronous>, transform_indices = @transform_4, window_bounds = array<i64: 1, 128>}, {pipeline_mode = #tpu.pipeline_mode<synchronous>, transform_indices = @transform_5, window_bounds = array<i64: 128, 128>}, {pipeline_mode = #tpu.pipeline_mode<synchronous>, transform_indices = @transform_6, window_bounds = array<i64: 1, 128>}, {transform_indices = @transform_7, window_bounds = array<i64: 8, 128>}]} {
    %c0 = arith.constant 0 : index
    %c0_0 = arith.constant 0 : index
    %0 = vector.load %arg1[%c0, %c0_0] : memref<8x675xf32, #tpu.memory_space<vmem>>, vector<8x675xf32>
    %1 = arith.truncf %0 : vector<8x675xf32> to vector<8x675xbf16>
    %c0_1 = arith.constant 0 : index
    %c0_2 = arith.constant 0 : index
    %2 = vector.load %arg2[%c0_1, %c0_2] : memref<675x128xbf16, #tpu.memory_space<vmem>>, vector<675x128xbf16>
    %cst = arith.constant dense<0.000000e+00> : vector<8x128xf32>
    %3 = tpu.matmul %1, %2, %cst {dimension_numbers = #tpu.dot_dimension_numbers<[1], [0], [0], [1], [0, 0, 1, 1], [], []>} : vector<8x675xbf16>, vector<675x128xbf16>, vector<8x128xf32> -> vector<8x128xf32>
    %c0_3 = arith.constant 0 : index
    %c0_4 = arith.constant 0 : index
    %4 = vector.load %arg3[%c0_3, %c0_4] : memref<1x128xf32, #tpu.memory_space<vmem>>, vector<1x128xf32>
    %5 = vector.broadcast %4 : vector<1x128xf32> to vector<8x128xf32>
    %6 = arith.addf %3, %5 : vector<8x128xf32>
    %cst_5 = arith.constant 0.000000e+00 : f32
    %7 = vector.broadcast %cst_5 : f32 to vector<8x128xf32>
    %8 = arith.maximumf %6, %7 : vector<8x128xf32>
    %9 = arith.truncf %8 : vector<8x128xf32> to vector<8x128xbf16>
    %c0_6 = arith.constant 0 : index
    %c0_7 = arith.constant 0 : index
    %10 = vector.load %arg4[%c0_6, %c0_7] : memref<128x128xbf16, #tpu.memory_space<vmem>>, vector<128x128xbf16>
    %cst_8 = arith.constant dense<0.000000e+00> : vector<8x128xf32>
    %11 = tpu.matmul %9, %10, %cst_8 {dimension_numbers = #tpu.dot_dimension_numbers<[1], [0], [0], [1], [0, 0, 1, 1], [], []>} : vector<8x128xbf16>, vector<128x128xbf16>, vector<8x128xf32> -> vector<8x128xf32>
    %c0_9 = arith.constant 0 : index
    %c0_10 = arith.constant 0 : index
    %12 = vector.load %arg5[%c0_9, %c0_10] : memref<1x128xf32, #tpu.memory_space<vmem>>, vector<1x128xf32>
    %13 = vector.broadcast %12 : vector<1x128xf32> to vector<8x128xf32>
    %14 = arith.addf %11, %13 : vector<8x128xf32>
    %cst_11 = arith.constant 0.000000e+00 : f32
    %15 = vector.broadcast %cst_11 : f32 to vector<8x128xf32>
    %16 = arith.maximumf %14, %15 : vector<8x128xf32>
    %17 = arith.truncf %16 : vector<8x128xf32> to vector<8x128xbf16>
    %c0_12 = arith.constant 0 : index
    %c0_13 = arith.constant 0 : index
    %18 = vector.load %arg6[%c0_12, %c0_13] : memref<128x128xbf16, #tpu.memory_space<vmem>>, vector<128x128xbf16>
    %cst_14 = arith.constant dense<0.000000e+00> : vector<8x128xf32>
    %19 = tpu.matmul %17, %18, %cst_14 {dimension_numbers = #tpu.dot_dimension_numbers<[1], [0], [0], [1], [0, 0, 1, 1], [], []>} : vector<8x128xbf16>, vector<128x128xbf16>, vector<8x128xf32> -> vector<8x128xf32>
    %c0_15 = arith.constant 0 : index
    %c0_16 = arith.constant 0 : index
    %20 = vector.load %arg7[%c0_15, %c0_16] : memref<1x128xf32, #tpu.memory_space<vmem>>, vector<1x128xf32>
    %21 = vector.broadcast %20 : vector<1x128xf32> to vector<8x128xf32>
    %22 = arith.addf %19, %21 : vector<8x128xf32>
    %23 = arith.truncf %22 : vector<8x128xf32> to vector<8x128xbf16>
    %c0_17 = arith.constant 0 : index
    %c0_18 = arith.constant 0 : index
    %24 = vector.load %arg8[%c0_17, %c0_18] : memref<8x128xbf16, #tpu.memory_space<vmem>>, vector<8x128xbf16>
    tpu.vector_store %arg8[%c0_17, %c0_18], %23 {strides = array<i32>} : memref<8x128xbf16, #tpu.memory_space<vmem>>, vector<8x128xbf16>,
    return
  }
  func.func @transform_0(%arg0: i32) -> (i32, i32) {
    %c0_i32 = arith.constant 0 : i32
    %c0_i32_0 = arith.constant 0 : i32
    return %arg0, %c0_i32 : i32, i32
  }
  func.func @transform_1(%arg0: i32) -> (i32, i32) {
    %c0_i32 = arith.constant 0 : i32
    %c0_i32_0 = arith.constant 0 : i32
    %c0_i32_1 = arith.constant 0 : i32
    return %c0_i32, %c0_i32_0 : i32, i32
  }
  func.func @transform_2(%arg0: i32) -> (i32, i32) {
    %c0_i32 = arith.constant 0 : i32
    %c0_i32_0 = arith.constant 0 : i32
    %c0_i32_1 = arith.constant 0 : i32
    return %c0_i32, %c0_i32_0 : i32, i32
  }
  func.func @transform_3(%arg0: i32) -> (i32, i32) {
    %c0_i32 = arith.constant 0 : i32
    %c0_i32_0 = arith.constant 0 : i32
    %c0_i32_1 = arith.constant 0 : i32
    return %c0_i32, %c0_i32_0 : i32, i32
  }
  func.func @transform_4(%arg0: i32) -> (i32, i32) {
    %c0_i32 = arith.constant 0 : i32
    %c0_i32_0 = arith.constant 0 : i32
    %c0_i32_1 = arith.constant 0 : i32
    return %c0_i32, %c0_i32_0 : i32, i32
  }
  func.func @transform_5(%arg0: i32) -> (i32, i32) {
    %c0_i32 = arith.constant 0 : i32
    %c0_i32_0 = arith.constant 0 : i32
    %c0_i32_1 = arith.constant 0 : i32
    return %c0_i32, %c0_i32_0 : i32, i32
  }
  func.func @transform_6(%arg0: i32) -> (i32, i32) {
    %c0_i32 = arith.constant 0 : i32
    %c0_i32_0 = arith.constant 0 : i32
    %c0_i32_1 = arith.constant 0 : i32
    return %c0_i32, %c0_i32_0 : i32, i32
  }
  func.func @transform_7(%arg0: i32) -> (i32, i32) {
    %c0_i32 = arith.constant 0 : i32
    %c0_i32_0 = arith.constant 0 : i32
    return %arg0, %c0_i32 : i32, i32
  }
}

</mosaic_0001>

<bundles_post_ra>
// kernel: traffic_sign_net_forward.1
= control target key start
LH: loop header
LB: loop body
LE: loop exit
PB: predicated region body
PF: predicated region fallthrough
CT: control target
= control target key end

     0   :  { %vm387_vm0 = vcmask 1040384   ;;  %vm388_vm1 = vcmask 1041408   ;;  %v939_v28 = vmov 65535   ;;  %vm383_vm2 = vcmask 285696   ;;  %s1187_s1 = inlined_call_operand.vmem [shape: bf16[675,128], index: 1, kind: input, shape index: {}]   ;;  %s1188_s2 = inlined_call_operand.vmem [shape: f32[1,128], index: 2, kind: input, shape index: {}]   ;;  %s1189_s0 = inlined_call_operand.vmem [shape: f32[8,675], index: 0, kind: input, shape index: {}]   ;;  %s1190_s4 = inlined_call_operand.vmem [shape: f32[1,128], index: 4, kind: input, shape index: {}]   ;;  %s1191_s3 = inlined_call_operand.vmem [shape: bf16[128,128], index: 3, kind: input, shape index: {}]   ;;  %s1192_s5 = inlined_call_operand.vmem [shape: bf16[128,128], index: 5, kind: input, shape index: {}]   ;;  %s1193_s6 = inlined_call_operand.vmem [shape: f32[1,128], index: 6, kind: input, shape index: {}]   ;;  %s1194_s7 = inlined_call_operand.vmem [shape: bf16[8,128], index: 7, kind: output, shape index: {}]  }
   0x1   :  { %v884_v0 = vld [vmem:[%s1187_s1 + $0x38] sm:$0xff]  ;;  %v883_v3 = vld [vmem:[%s1187_s1 + $0x30] sm:$0xff]  ;;  %v882_v8 = vld [vmem:[%s1187_s1 + $0x28] sm:$0xff]  ;;  %v389_v29 = vsel %vm387_vm0, 4294967295, %v939_v28 }
   0x2   :  { %v892_v1 = vld [vmem:[%s1187_s1 + $0x78] sm:$0xff]  ;;  %394 = vmatpush.bf16.msra.mxu0 %v884_v0  ;;  %v891_v4 = vld [vmem:[%s1187_s1 + $0x70] sm:$0xff]  ;;  %v890_v9 = vld [vmem:[%s1187_s1 + $0x68] sm:$0xff]  ;;  %v390_v34 = vsel %vm388_vm1, %v389_v29, 0 }
   0x3   :  { %v900_v2 = vld [vmem:[%s1187_s1 + $0xb8] sm:$0xff]  ;;  %407 = vmatpush.bf16.msra.mxu1 %v892_v1  ;;  %v899_v6 = vld [vmem:[%s1187_s1 + $0xb0] sm:$0xff]  ;;  %v898_v10 = vld [vmem:[%s1187_s1 + $0xa8] sm:$0xff] }
   0x4   :  { %v908_v5 = vld [vmem:[%s1187_s1 + $0xf8] sm:$0xff]  ;;  %420 = vmatpush.bf16.msra.mxu2 %v900_v2  ;;  %v907_v7 = vld [vmem:[%s1187_s1 + $0xf0] sm:$0xff]  ;;  %v906_v11 = vld [vmem:[%s1187_s1 + $0xe8] sm:$0xff] }
   0x5   :  { %433 = vmatpush.bf16.msra.mxu3 %v908_v5  ;;  %v881_v12 = vld [vmem:[%s1187_s1 + $0x20] sm:$0xff]  ;;  %v880_v16 = vld [vmem:[%s1187_s1 + $0x18] sm:$0xff]  ;;  %v123_v20 = vld [vmem:[%s1187_s1 + $0x150] sm:$0x3] }
   0x6   :  { %395 = vmatpush.bf16.msra.mxu0 %v883_v3  ;;  %v889_v13 = vld [vmem:[%s1187_s1 + $0x60] sm:$0xff]  ;;  %v888_v17 = vld [vmem:[%s1187_s1 + $0x58] sm:$0xff]  ;;  %v879_v21 = vld [vmem:[%s1187_s1 + $0x10] sm:$0xff]  ;;  %v297_v25 = vunpack.c.l.b16 %v123_v20 }
   0x7   :  { %408 = vmatpush.bf16.msra.mxu1 %v891_v4  ;;  %v897_v14 = vld [vmem:[%s1187_s1 + $0xa0] sm:$0xff]  ;;  %v896_v18 = vld [vmem:[%s1187_s1 + $0x98] sm:$0xff]  ;;  %v887_v22 = vld [vmem:[%s1187_s1 + $0x50] sm:$0xff] }
   0x8   :  { %421 = vmatpush.bf16.msra.mxu2 %v899_v6  ;;  %v905_v15 = vld [vmem:[%s1187_s1 + $0xe0] sm:$0xff]  ;;  %v904_v19 = vld [vmem:[%s1187_s1 + $0xd8] sm:$0xff]  ;;  %v895_v23 = vld [vmem:[%s1187_s1 + $0x90] sm:$0xff]  ;;  %v340_v32 = vpack.c.b16 %v297_v25, %v297_v25 }
   0x9   :  { %434 = vmatpush.bf16.msra.mxu3 %v907_v7  ;;  %v903_v24 = vld [vmem:[%s1187_s1 + $0xd0] sm:$0xff]  ;;  %v878_v26 = vld [vmem:[%s1187_s1 + $0x8] sm:$0xff]  ;;  %v877_v33 = vld [vmem:[%s1187_s1] sm:$0xff] }
   0xa   :  { %396 = vmatpush.bf16.msra.mxu0 %v882_v8  ;;  %v886_v27 = vld [vmem:[%s1187_s1 + $0x48] sm:$0xff]  ;;  %v885_v35 = vld [vmem:[%s1187_s1 + $0x40] sm:$0xff]  ;;  %v916_v38 = vld [vmem:[%s1187_s1 + $0x138] sm:$0xff]  ;;  %v392_v42 = vand.u32 %v390_v34, %v340_v32 }
   0xb   :  { %409 = vmatpush.bf16.msra.mxu1 %v890_v9  ;;  %v894_v30 = vld [vmem:[%s1187_s1 + $0x88] sm:$0xff]  ;;  %v27_v36 = vld [vmem:[%s1189_s0] sm:$0xff]  ;;  %v29_v40 = vld [vmem:[%s1189_s0 + $0x10] sm:$0xff] }
   0xc   :  { %422 = vmatpush.bf16.msra.mxu2 %v898_v10  ;;  %v902_v31 = vld [vmem:[%s1187_s1 + $0xc8] sm:$0xff]  ;;  %v893_v39 = vld [vmem:[%s1187_s1 + $0x80] sm:$0xff]  ;;  %v30_v43 = vld [vmem:[%s1189_s0 + $0x18] sm:$0xff]  ;;  %v33_v44 = vpack.c.bf16 %v27_v36, %v27_v36  ;;  %v35_v46 = vpack.c.bf16 %v29_v40, %v29_v40 }
   0xd   :  { %435 = vmatpush.bf16.msra.mxu3 %v906_v11  ;;  %v28_v37 = vld [vmem:[%s1189_s0 + $0x8] sm:$0xff]  ;;  %v901_v41 = vld [vmem:[%s1187_s1 + $0xc0] sm:$0xff]  ;;  %v915_v47 = vld [vmem:[%s1187_s1 + $0x130] sm:$0xff]  ;;  %v36_v48 = vpack.c.bf16 %v30_v43, %v30_v43 }
   0xe   :  { %397 = vmatpush.bf16.msra.mxu0 %v881_v12  ;;  %v34_v45 = vpack.c.bf16 %v28_v37, %v28_v37  ;;  %v918_v49 = vld [vmem:[%s1187_s1 + $0x148] sm:$0xff]  ;;  %v917_v51 = vld [vmem:[%s1187_s1 + $0x140] sm:$0xff]  ;;  %v912_v54 = vld [vmem:[%s1187_s1 + $0x118] sm:$0xff] }
   0xf   :  { %410 = vmatpush.bf16.msra.mxu1 %v889_v13  ;;  %v914_v50 = vld [vmem:[%s1187_s1 + $0x128] sm:$0xff]  ;;  %v913_v52 = vld [vmem:[%s1187_s1 + $0x120] sm:$0xff]  ;;  %v911_v56 = vld [vmem:[%s1187_s1 + $0x110] sm:$0xff] }
  0x10   :  { %423 = vmatpush.bf16.msra.mxu2 %v897_v14  ;;  %v32_v53 = vld [vmem:[%s1189_s0 + $0x28] sm:$0xff]  ;;  %v909_v58 = vld [vmem:[%s1187_s1 + $0x100] sm:$0xff]  ;;  %v926_v61 = vld [vmem:[%s1191_s3 + $0x38] sm:$0xff] }
  0x11   :  { %436 = vmatpush.bf16.msra.mxu3 %v905_v15  ;;  %v38_v55 = vpack.c.bf16 %v32_v53, %v32_v53  ;;  %v910_v57 = vld [vmem:[%s1187_s1 + $0x108] sm:$0xff]  ;;  %v31_v59 = vld [vmem:[%s1189_s0 + $0x20] sm:$0xff]  ;;  %v925_v62 = vld [vmem:[%s1191_s3 + $0x30] sm:$0xff] }
  0x12   :  { %398 = vmatpush.bf16.msra.mxu0 %v880_v16  ;;  %v37_v60 = vpack.c.bf16 %v31_v59, %v31_v59  ;;  %v924_v63 = vld [vmem:[%s1191_s3 + $0x28] sm:$0xff]  ;;  %v923_v0 = vld [vmem:[%s1191_s3 + $0x20] sm:$0xff]  ;;  %v922_v1 = vld [vmem:[%s1191_s3 + $0x18] sm:$0xff] }
  0x13   :  { %411 = vmatpush.bf16.msra.mxu1 %v888_v17  ;;  %v921_v2 = vld [vmem:[%s1191_s3 + $0x10] sm:$0xff]  ;;  %v920_v3 = vld [vmem:[%s1191_s3 + $0x8] sm:$0xff]  ;;  %v919_v6 = vld [vmem:[%s1191_s3] sm:$0xff] }
  0x14   :  { %424 = vmatpush.bf16.msra.mxu2 %v896_v18  ;;  %v934_v7 = vld [vmem:[%s1192_s5 + $0x38] sm:$0xff]  ;;  %v933_v11 = vld [vmem:[%s1192_s5 + $0x30] sm:$0xff]  ;;  %v936_v13 = vld [vmem:[%s1188_s2] ss:$0 sm:$0xff] }
  0x15   :  { %437 = vmatpush.bf16.msra.mxu3 %v904_v19  ;;  %v932_v14 = vld [vmem:[%s1192_s5 + $0x28] sm:$0xff]  ;;  %v931_v18 = vld [vmem:[%s1192_s5 + $0x20] sm:$0xff] }
  0x16   :  { %399 = vmatpush.bf16.msra.mxu0 %v879_v21  ;;  %v930_v21 = vld [vmem:[%s1192_s5 + $0x18] sm:$0xff]  ;;  %v928_v32 = vld [vmem:[%s1192_s5 + $0x8] sm:$0xff]  ;;  %v937_v34 = vld [vmem:[%s1190_s4] ss:$0 sm:$0xff] }
  0x17   :  { %412 = vmatpush.bf16.msra.mxu1 %v887_v22  ;;  %v938_v40 = vld [vmem:[%s1193_s6] ss:$0 sm:$0xff] }
  0x18   :  { %425 = vmatpush.bf16.msra.mxu2 %v895_v23 }
  0x19   :  { %438 = vmatpush.bf16.msra.mxu3 %v903_v24  ;;  %v929_v24 = vld [vmem:[%s1192_s5 + $0x10] sm:$0xff] }
  0x1a   :  { %400 = vmatpush.bf16.msra.mxu0 %v878_v26 }
  0x1b   :  { %413 = vmatpush.bf16.msra.mxu1 %v886_v27 }
  0x1c   :  { %426 = vmatpush.bf16.msra.mxu2 %v894_v30 }
  0x1d   :  { %439 = vmatpush.bf16.msra.mxu3 %v902_v31 }
  0x1e   :  { %401 = vmatpush.bf16.msra.mxu0 %v877_v33  ;;  %v927_v33 = vld [vmem:[%s1192_s5] sm:$0xff] }
  0x1f   :  { %414 = vmatpush.bf16.msra.mxu1 %v885_v35 }
  0x20   :  { %427 = vmatpush.bf16.msra.mxu2 %v893_v39 }
  0x21   :  { %440 = vmatpush.bf16.msra.mxu3 %v901_v41  ;;  %402 = vmatmul.bf16.vlgmr.msra.gmra.mxu0 %v33_v44 }
  0x22   :  { %446 = vmatpush.bf16.msrb.mxu0 %v916_v38  ;;  %415 = vmatmul.bf16.vlgmr.msra.gmra.mxu1 %v34_v45 }
  0x23   :  { %464 = vmatpush.bf16.msrb.mxu1 %v392_v42  ;;  %428 = vmatmul.bf16.vlgmr.msra.gmra.mxu2 %v35_v46 }
  0x24   :  { %441 = vmatmul.bf16.vlgmr.msra.gmra.mxu3 %v36_v48  ;;  %542 = vmatpush.bf16.msrb.mxu2 %v926_v61 }
  0x25   :  { %625 = vmatpush.bf16.msrb.mxu3 %v934_v7 }
  0x26   :  { %447 = vmatpush.bf16.msrb.mxu0 %v915_v47 }
  0x27   :  { %465 = vmatpush.bf16.msrb.mxu1 %v918_v49 }
  0x28   :  { %543 = vmatpush.bf16.msrb.mxu2 %v925_v62 }
  0x29   :  { %626 = vmatpush.bf16.msrb.mxu3 %v933_v11 }
  0x2a   :  { %448 = vmatpush.bf16.msrb.mxu0 %v914_v50 }
  0x2b   :  { %466 = vmatpush.bf16.msrb.mxu1 %v917_v51 }
  0x2c   :  { %544 = vmatpush.bf16.msrb.mxu2 %v924_v63 }
  0x2d   :  { %627 = vmatpush.bf16.msrb.mxu3 %v932_v14 }
  0x2e   :  { %449 = vmatpush.bf16.msrb.mxu0 %v913_v52 }
  0x30   :  { %545 = vmatpush.bf16.msrb.mxu2 %v923_v0 }
  0x31   :  { %628 = vmatpush.bf16.msrb.mxu3 %v931_v18 }
  0x32   :  { %450 = vmatpush.bf16.msrb.mxu0 %v912_v54  ;;  %812 = vmatmul.msk.bf16.vlgmr.msrb.gmra.mxu1 %vm383_vm2, %v38_v55 }
  0x34   :  { %546 = vmatpush.bf16.msrb.mxu2 %v922_v1 }
  0x35   :  { %629 = vmatpush.bf16.msrb.mxu3 %v930_v21 }
  0x36   :  { %451 = vmatpush.bf16.msrb.mxu0 %v911_v56 }
  0x38   :  { %547 = vmatpush.bf16.msrb.mxu2 %v921_v2 }
  0x39   :  { %630 = vmatpush.bf16.msrb.mxu3 %v929_v24 }
  0x3a   :  { %452 = vmatpush.bf16.msrb.mxu0 %v910_v57 }
  0x3c   :  { %548 = vmatpush.bf16.msrb.mxu2 %v920_v3 }
  0x3d   :  { %631 = vmatpush.bf16.msrb.mxu3 %v928_v32 }
  0x3e   :  { %453 = vmatpush.bf16.msrb.mxu0 %v909_v58 }
  0x40   :  { %549 = vmatpush.bf16.msrb.mxu2 %v919_v6 }
  0x41   :  { %454 = vmatmul.bf16.vlgmr.msrb.gmra.mxu0 %v37_v60  ;;  %632 = vmatpush.bf16.msrb.mxu3 %v927_v33 }
  0x9e   :  { %v403_v4 = vpop.f32.mrf.mxu0 }
  0x9f   :  { %v416_v5 = vpop.f32.mrf.mxu1  ;;  %v404_v16 = vadd.f32 %v936_v13, %v403_v4 }
  0xa1   :  { %v417_v20 = vadd.f32 %v416_v5, %v404_v16 }
  0xa6   :  { %v429_v8 = vpop.f32.mrf.mxu2  ;;  %v405_v9 = vpop.f32.mrf.mxu0 }
  0xa7   :  { %v418_v10 = vpop.f32.mrf.mxu1  ;;  %v442_v12 = vpop.f32.mrf.mxu3  ;;  %v430_v22 = vadd.f32 %v429_v8, %v417_v20 }
  0xa9   :  { %v443_v25 = vadd.f32 %v442_v12, %v430_v22 }
  0xae   :  { %v431_v15 = vpop.f32.mrf.mxu2 }
  0xaf   :  { %v468_v17 = vpop.f32.mrf.mxu1  ;;  %v444_v19 = vpop.f32.mrf.mxu3 }
  0xb7   :  { %v470_v23 = vpop.f32.mrf.mxu1 }
  0xbe   :  { %v455_v26 = vpop.f32.mrf.mxu0 }
  0xbf   :  { %v456_v27 = vadd.f32 %v455_v26, %v443_v25 }
  0xc1   :  { %v469_v28 = vadd.f32 %v468_v17, %v456_v27 }
  0xc3   :  { %v472_v29 = vmax.f32 %v469_v28, 0.0 }
  0xc5   :  { %v473_v30 = vpack.c.bf16 %v472_v29, %v472_v29 }
  0xc6   :  { %v457_v31 = vpop.f32.mrf.mxu0 }
  0xc7   :  { %550 = vmatmul.bf16.vlgmr.msrb.gmra.mxu2 %v473_v30 }
 0x14a   :  { %v551_v35 = vpop.f32.mrf.mxu2 }
 0x14b   :  { %v552_v36 = vadd.f32 %v937_v34, %v551_v35 }
 0x14d   :  { %v555_v37 = vmax.f32 %v552_v36, 0.0 }
 0x14f   :  { %v556_v38 = vpack.c.bf16 %v555_v37, %v555_v37 }
 0x151   :  { %633 = vmatmul.bf16.vlgmr.msrb.gmra.mxu3 %v556_v38 }
 0x152   :  { %v553_v39 = vpop.f32.mrf.mxu2 }
 0x1d4   :  { %v634_v41 = vpop.f32.mrf.mxu3 }
 0x1d5   :  { %v635_v42 = vadd.f32 %v938_v40, %v634_v41 }
 0x1d7   :  { %v638_v43 = vpack.c.bf16 %v635_v42, %v635_v42 }
 0x1d9   :  { %639 = vst [vmem:[%s1194_s7] sm:$0xf] %v638_v43 }
 0x1dc   :  { %v636_v44 = vpop.f32.mrf.mxu3 }

</bundles_post_ra>
